<compile_context>
chip_gen: v7x
topology: tpu7x:2x2x1
jax: 0.10.0
libtpu: 0.0.40
codegen_flags: <defaults>
</compile_context>

<pallas_src>
import numpy as np
import jax
import jax.numpy as jnp
from jax.experimental import pallas as pl
from jax.experimental.pallas import tpu as pltpu


def _round_up(a, m):
    return -(-a // m) * m


# ----------------------------- kernel ----------------------------------------

def _make_decoder_block_kernel(negative_slope, keep_prob, training, out_dim):
    """Builds the fused Linear + LeakyReLU + Dropout kernel (static config)."""
    apply_dropout = bool(training) and keep_prob < 1.0
    if apply_dropout:
        # uint32 threshold: keep iff hash_bits < keep_prob * 2^32.
        threshold = min(int(round(keep_prob * 4294967296.0)), 4294967295)
        inv_keep = np.float32(1.0 / keep_prob)
    ns = np.float32(negative_slope)

    def kernel(seed_ref, x_ref, w_ref, b_ref, o_ref):
        # bf16 x bf16 on the MXU, f32 accumulation.
        y = jnp.dot(x_ref[...].astype(jnp.bfloat16), w_ref[...],
                    preferred_element_type=jnp.float32)
        y = y + b_ref[...]                                  # bias (1, tn) -> bcast
        # LeakyReLU(negative_slope)
        y = jnp.where(y >= 0.0, y, y * ns)

        if apply_dropout:
            shape = y.shape
            i = pl.program_id(0)
            j = pl.program_id(1)
            # Global element index (tiling-invariant), then murmur3 fmix32.
            row = (jax.lax.broadcasted_iota(jnp.int32, shape, 0)
                   + i * shape[0]).astype(jnp.uint32)
            col = (jax.lax.broadcasted_iota(jnp.int32, shape, 1)
                   + j * shape[1]).astype(jnp.uint32)
            idx = row * jnp.uint32(out_dim) + col
            seed = seed_ref[0].astype(jnp.uint32)
            h = idx ^ (seed * jnp.uint32(0x9E3779B9))
            h = h ^ (h >> 16)
            h = h * jnp.uint32(0x85EBCA6B)
            h = h ^ (h >> 13)
            h = h * jnp.uint32(0xC2B2AE35)
            h = h ^ (h >> 16)
            keep = h < jnp.uint32(threshold)
            y = jnp.where(keep, y * inv_keep, 0.0)

        o_ref[...] = y.astype(o_ref.dtype)

    return kernel


# ----------------------------- tiling ----------------------------------------

def _choose_tiles(B, in_dim, out_dim, x_bytes, w_bytes, o_bytes,
                  vmem_budget=24 * 1024 * 1024):
    # out_dim tile: lane-dense (multiple of 128) whenever possible.
    if out_dim % 128 == 0:
        tn = min(out_dim, 512)
    else:
        tn = out_dim  # full-width block; Pallas masks ragged lanes.
    # Shrink tn if the resident (in_dim, tn) W slab alone would blow the budget.
    # NOTE: for extremely wide layers a K (in_dim) tiling with an f32 VMEM
    # accumulator would be the next step; not needed at these sizes.
    while tn > 128 and tn % 256 == 0 and 2 * in_dim * tn * w_bytes > vmem_budget // 2:
        tn //= 2

    # Row tile: multiple of 8, sized from the remaining (double-buffered) budget,
    # capped at 1024 rows (v6e measurement: 1024-row tiles ~86% of HBM roofline).
    fixed = 2 * in_dim * tn * w_bytes + 2 * tn * 4
    per_row = 2 * (in_dim * x_bytes + tn * o_bytes)
    tm_cap = max(8, (vmem_budget - fixed) // max(per_row, 1))
    tm = max(8, min(1024, _round_up(min(B, tm_cap), 8)))

    # If the grid would degenerate to a single step, split N so both TensorCores
    # of a v7x megacore get work (no-op on v5e/v6e).
    n_row = -(-B // tm)
    n_col = -(-out_dim // tn)
    if n_row == 1 and n_col == 1 and out_dim % 256 == 0 and out_dim // 2 >= 128:
        tn = out_dim // 2
    return tm, tn


# ----------------------------- wrapper ----------------------------------------

def decoder_block_forward(x, w, b, *, negative_slope=0.2, do_rate=0.0,
                          training=False, seed=0, out_dtype=None):
    """Mirrors DecoderBlock.forward(x).

    x: (B, in_dim) f32
    w: (in_dim, out_dim) f32  (torch weight (out,in) stored pre-transposed)
    b: (out_dim,) or (1, out_dim) f32
    """
    B, in_dim = x.shape
    out_dim = w.shape[1]
    assert w.shape == (in_dim, out_dim)
    b = jnp.reshape(b, (1, out_dim))
    out_dtype = x.dtype if out_dtype is None else jnp.dtype(out_dtype)

    # bf16 weights: ~3x MXU throughput and half the W DMA/VMEM bytes.
    w_bf16 = w.astype(jnp.bfloat16)

    x_bytes = jnp.dtype(x.dtype).itemsize
    o_bytes = jnp.dtype(out_dtype).itemsize
    tm, tn = _choose_tiles(B, in_dim, out_dim, x_bytes, 2, o_bytes)
    grid = (pl.cdiv(B, tm), pl.cdiv(out_dim, tn))

    # Explicit VMEM budget (double-buffered working set + headroom).
    ws = (2 * tm * in_dim * x_bytes + 2 * in_dim * tn * 2
          + 2 * tn * 4 + 2 * tm * tn * o_bytes)
    vmem_limit = int(min(max(ws + (4 << 20), 16 << 20), 64 << 20))

    kernel = _make_decoder_block_kernel(negative_slope, 1.0 - do_rate,
                                        training, out_dim)
    seed_arr = jnp.asarray([seed], jnp.int32)

    cost = pl.CostEstimate(
        flops=2 * B * in_dim * out_dim,
        transcendentals=0,
        bytes_accessed=(B * in_dim * x_bytes + in_dim * out_dim * 2
                        + out_dim * 4 + B * out_dim * o_bytes))

    grid_spec = pltpu.PrefetchScalarGridSpec(
        num_scalar_prefetch=1,                     # seed lives in SMEM
        grid=grid,
        in_specs=[
            pl.BlockSpec((tm, in_dim), lambda i, j, s: (i, 0)),   # x row tile
            pl.BlockSpec((in_dim, tn), lambda i, j, s: (0, j)),   # W column slab
            pl.BlockSpec((1, tn), lambda i, j, s: (0, j)),        # bias slab
        ],
        out_specs=pl.BlockSpec((tm, tn), lambda i, j, s: (i, j)),
    )

    out = pl.pallas_call(
        kernel,
        out_shape=jax.ShapeDtypeStruct((B, out_dim), out_dtype),
        grid_spec=grid_spec,
        compiler_params=pltpu.CompilerParams(
            dimension_semantics=("parallel", "parallel"),
            vmem_limit_bytes=vmem_limit),
        cost_estimate=cost,
    )(seed_arr, x, w_bf16, b)
    return out


# ----------------------------- pure-JAX reference -----------------------------

def reference_eval(x, w, b, negative_slope):
    y = jnp.dot(x, w, precision=jax.lax.Precision.HIGHEST) + b
    return jnp.where(y >= 0.0, y, y * negative_slope)


# ----------------------------------- main --------------------------------------

if __name__ == "__main__":
    B, in_dim, out_dim = 64, 128, 256
    do_rate, neg_slope = 0.3, 0.2

    key = jax.random.PRNGKey(0)
    kx, kw, kb = jax.random.split(key, 3)
    bound = 1.0 / np.sqrt(in_dim)
    x = jax.random.normal(kx, (B, in_dim), jnp.float32)
    w = jax.random.uniform(kw, (in_dim, out_dim), jnp.float32, -bound, bound)
    b = jax.random.uniform(kb, (1, out_dim), jnp.float32, -bound, bound)

    # --- eval mode (dropout = identity) vs reference ---
    out_eval = jax.block_until_ready(
        decoder_block_forward(x, w, b, negative_slope=neg_slope,
                              do_rate=do_rate, training=False))
    ref = reference_eval(x, w, b, neg_slope)
    np.testing.assert_allclose(np.asarray(out_eval), np.asarray(ref),
                               rtol=2e-2, atol=2e-2)
    assert out_eval.shape == (B, out_dim)

    # --- train mode: kept elements are out_eval / keep_prob, rest are zero ---
    out_train = jax.block_until_ready(
        decoder_block_forward(x, w, b, negative_slope=neg_slope,
                              do_rate=do_rate, training=True, seed=1234))
    keep_prob = 1.0 - do_rate
    ot = np.asarray(out_train)
    oe = np.asarray(out_eval)
    kept = ot != 0.0
    np.testing.assert_allclose(ot[kept], oe[kept] / keep_prob,
                               rtol=1e-4, atol=1e-6)
    drop_frac = 1.0 - kept.mean()
    assert abs(drop_frac - do_rate) < 0.08, f"unexpected drop rate {drop_frac}"

    print("KERNEL_OK")
</pallas_src>

<mosaic_0001>
module attributes {stable_mosaic.version = 11 : i64} {
  func.func @kernel(%arg0: i32, %arg1: i32, %arg2: memref<1xi32, #tpu.memory_space<smem>>, %arg3: memref<64x128xf32, #tpu.memory_space<vmem>>, %arg4: memref<128x128xbf16, #tpu.memory_space<vmem>>, %arg5: memref<1x128xf32, #tpu.memory_space<vmem>>, %arg6: memref<64x128xf32, #tpu.memory_space<vmem>>) attributes {dimension_semantics = [#tpu.dimension_semantics<parallel>, #tpu.dimension_semantics<parallel>], iteration_bounds = array<i64: 1, 2>, scalar_prefetch = 1 : i64, scratch_operands = 0 : i64, tpu.core_type = #tpu.core_type<tc>, window_params = [{transform_indices = @transform_0, window_bounds = array<i64: 64, 128>}, {transform_indices = @transform_1, window_bounds = array<i64: 128, 128>}, {transform_indices = @transform_2, window_bounds = array<i64: 1, 128>}, {transform_indices = @transform_3, window_bounds = array<i64: 64, 128>}]} {
    %c0 = arith.constant 0 : index
    %c0_0 = arith.constant 0 : index
    %0 = vector.load %arg3[%c0, %c0_0] : memref<64x128xf32, #tpu.memory_space<vmem>>, vector<64x128xf32>
    %1 = arith.truncf %0 : vector<64x128xf32> to vector<64x128xbf16>
    %c0_1 = arith.constant 0 : index
    %c0_2 = arith.constant 0 : index
    %2 = vector.load %arg4[%c0_1, %c0_2] : memref<128x128xbf16, #tpu.memory_space<vmem>>, vector<128x128xbf16>
    %cst = arith.constant dense<0.000000e+00> : vector<64x128xf32>
    %3 = tpu.matmul %1, %2, %cst {dimension_numbers = #tpu.dot_dimension_numbers<[1], [0], [0], [1], [0, 0, 1, 1], [], []>} : vector<64x128xbf16>, vector<128x128xbf16>, vector<64x128xf32> -> vector<64x128xf32>
    %c0_3 = arith.constant 0 : index
    %c0_4 = arith.constant 0 : index
    %4 = vector.load %arg5[%c0_3, %c0_4] : memref<1x128xf32, #tpu.memory_space<vmem>>, vector<1x128xf32>
    %5 = vector.broadcast %4 : vector<1x128xf32> to vector<64x128xf32>
    %6 = arith.addf %3, %5 : vector<64x128xf32>
    %cst_5 = arith.constant 0.000000e+00 : f32
    %7 = vector.broadcast %cst_5 : f32 to vector<64x128xf32>
    %8 = arith.cmpf oge, %6, %7 : vector<64x128xf32>
    %cst_6 = arith.constant 2.000000e-01 : f32
    %9 = vector.broadcast %cst_6 : f32 to vector<64x128xf32>
    %10 = arith.mulf %6, %9 : vector<64x128xf32>
    %11 = arith.select %8, %6, %10 : vector<64x128xi1>, vector<64x128xf32>
    %c0_7 = arith.constant 0 : index
    %c0_8 = arith.constant 0 : index
    %12 = vector.load %arg6[%c0_7, %c0_8] : memref<64x128xf32, #tpu.memory_space<vmem>>, vector<64x128xf32>
    tpu.vector_store %arg6[%c0_7, %c0_8], %11 {strides = array<i32>} : memref<64x128xf32, #tpu.memory_space<vmem>>, vector<64x128xf32>,
    return
  }
  func.func @transform_0(%arg0: i32, %arg1: i32, %arg2: memref<1xi32, #tpu.memory_space<smem>>) -> (i32, i32) {
    %c0_i32 = arith.constant 0 : i32
    %c0_i32_0 = arith.constant 0 : i32
    return %arg0, %c0_i32 : i32, i32
  }
  func.func @transform_1(%arg0: i32, %arg1: i32, %arg2: memref<1xi32, #tpu.memory_space<smem>>) -> (i32, i32) {
    %c0_i32 = arith.constant 0 : i32
    %c0_i32_0 = arith.constant 0 : i32
    return %c0_i32, %arg1 : i32, i32
  }
  func.func @transform_2(%arg0: i32, %arg1: i32, %arg2: memref<1xi32, #tpu.memory_space<smem>>) -> (i32, i32) {
    %c0_i32 = arith.constant 0 : i32
    %c0_i32_0 = arith.constant 0 : i32
    return %c0_i32, %arg1 : i32, i32
  }
  func.func @transform_3(%arg0: i32, %arg1: i32, %arg2: memref<1xi32, #tpu.memory_space<smem>>) -> (i32, i32) {
    %c0_i32 = arith.constant 0 : i32
    return %arg0, %arg1 : i32, i32
  }
}

</mosaic_0001>

<bundles_post_ra>
// kernel: tpu_custom_call.1
= control target key start
LH: loop header
LB: loop body
LE: loop exit
PB: predicated region body
PF: predicated region fallthrough
CT: control target
= control target key end

     0   :  { %10 = vsyncpa [#allocation5], 0  ;;  %s1144_s0 = inlined_call_operand.<no memory space> [shape: s32[1], index: 0, kind: input, shape index: {}]   ;;  %s1145_s1 = inlined_call_operand.hbm [shape: f32[64,128], index: 1, kind: input, shape index: {}]   ;;  %s1146_s2 = inlined_call_operand.hbm [shape: bf16[128,256], index: 2, kind: input, shape index: {}]   ;;  %s1147_s3 = inlined_call_operand.vmem [shape: f32[1,256], index: 3, kind: input, shape index: {}]   ;;  %s1148_s4 = inlined_call_operand.hbm [shape: f32[64,256], index: 4, kind: output, shape index: {}]  }
   0x1   :  { %11 = vsyncpa [#allocation8], 0 }
   0x2   :  { %13 = vsyncpa [#allocation8 + $0x1], 0 }
   0x3   :  { %14 = vsyncpa [#allocation6], 0 }
   0x4   :  { %16 = vsyncpa [#allocation6 + $0x1], 0  ;;  %s891_s15 = smov 0   ;;  %s893_s0 = smov 0  }
   0x5   :  { %s895_s16 = smov 0   ;;  %s897_s17 = smov 0  }
   0x6   :  { %s899_s18 = smov 0   ;;  %s901_s19 = smov 0  }
   0x7 LB: > { %s546_s20 = sadd.s32 4294967295, %s854_s19   ;;  %s547_s21 = sadd.s32 4294967294, %s854_s19   ;;  %s854_s19 = sphi %s901_s19, %s22_s19   ;;  %s850_s18 = sphi %s899_s18, %s1174_s18   ;;  %s846_s17 = sphi %s897_s17, %s1173_s17   ;;  %s842_s16 = sphi %s895_s16, %s1172_s16   ;;  %s838_s0 = sphi %s893_s0, %s1171_s0   ;;  %s834_s15 = sphi %s891_s15, %s1170_s15  }
   0x8   : > { %p74_p0 = scmp.ne.s32.totalorder %s842_s16, %s838_s0  ;;  %p75_p1 = scmp.eq.s32.totalorder %s854_s19, 0 }
   0x9   : > { %p80_p2 = scmp.ne.s32.totalorder %s838_s0, %s834_s15  ;;  %p928_p3 = scmp.eq.s32.totalorder %s546_s20, 0 }
   0xa   : > { %p932_p4 = por %p75_p1, %p74_p0  ;;  %p132_p5 = scmp.eq.s32.totalorder %s546_s20, 1 }
   0xb   : > { %s1155_s22 = scalar_select %p928_p3, 1, 0 }
   0xc   : > { %p938_p6 = por %p928_p3, %p80_p2  ;;  %p138_p7 = scmp.eq.s32.totalorder %s547_s21, 1 }
   0xd   : > { %p942_p8 = por %p132_p5, %p74_p0  ;;  %p548_p9 = scmp.ge.s32.totalorder %s854_s19, 1 }
   0xe   : > { %s1157_s24 = scalar_select %p938_p6, 1, 0 }
   0xf   : > { %s1158_s25 = scalar_select %p942_p8, 1, 0 }
  0x10   : > { %p947_p10 = por %p138_p7, %p80_p2  ;;  %p145_p11 = scmp.lt.s32.totalorder %s854_s19, 3 }
  0x11   : > { %s856_s28 = smov [#allocation4]   ;;  %p643_p1 = scmp.lt.s32.totalorder %s854_s19, 2 }
  0x12   : > { %s1159_s26 = scalar_select %p947_p10, 1, 0 }
  0x13   : > { %p952_p12 = pnand %p548_p9, %p145_p11  ;;  %s160_s29 = sshll.u32 %s856_s28, 4  ;;  %s956_s29 = int_to_ptr.vmem [resolvable:$true] %s160_s29 }
  0x14   : > { %p970_p2 = pnand %p643_p1, %p932_p4  ;;  %s31_s6 = sadd.s32 1, %s850_s18 }
  0x15   : > { %s1160_s27 = scalar_select %p952_p12, 1, 0 }
  0x16   : > { %p630_p13 = pneg %p952_p12  ;;  %s710_s9 = scalar_lea.hbm %s1145_s1, 1024 }
  0x17   : > { %s1162_s5 = scalar_select %p970_p2, 1, 0 }
  0x18   : > { %p964_p5 = pnand %p630_p13, %p928_p3  ;;  %p711_p7 = scmp.ne.s32.totalorder %s1145_s1, %s710_s9 }
  0x19   : > { %p717_p4 = scmp.lt.u32.totalorder %s710_s9, %s1145_s1 }
  0x1a   : > { %p712_p9 = pneg %p964_p5 }
  0x1c   : > { %p713_p11 = pnand %p712_p9, %p711_p7 }
  0x1e   : > { %p714_p13 = pneg %p713_p11 }
  0x20   : > { %p719_p1 = pnand %p717_p4, %p714_p13 }
  0x22   : > { %722 = shalt.err (!%p719_p1)
}
  0x23   : > { %s723_s14 = scalar_lea.vmem %s956_s29, 1024  ;;  %p731_p6 = scmp.lt.s32.totalorder %s956_s29, %s956_s29 }
  0x24   : > { %p724_p0 = scmp.ne.s32.totalorder %s956_s29, %s723_s14  ;;  %p732_p3 = scmp.lt.s32.totalorder %s723_s14, %s723_s14 }
  0x26   : > { %p726_p10 = pnand %p724_p0, %p712_p9  ;;  %p733_p12 = por %p732_p3, %p731_p6 }
  0x28   : > { %p727_p8 = pneg %p726_p10 }
  0x2a   : > { %p734_p2 = pnand %p733_p12, %p727_p8 }
  0x2c   : > { %737 = shalt.err (!%p734_p2)
}
  0x2d   : > { %s857_s20 = smov 128   ;;  %s858_s21 = smov 8  }
  0x2e   : > { %633 = dma.hbm_to_vmem [thread:$0]  (!%p964_p5), %s1145_s1, 1024, %s956_s29, [#allocation5], %s857_s20, %s857_s20, %s858_s21  }
  0x2f   : > { %p32_p10 = scmp.ge.s32.totalorder %s31_s6, 2  ;;  %s67_s7 = sadd.s32 1, %s842_s16 }
  0x30   : > { %s174_s8 = sand.u32 1, %s842_s16   ;;  %s552_s11 = sshll.u32 %s850_s18, 6 }
  0x31   : > { %s1176_s6 = smov (%p32_p10, %s31_s6), 0  ;;  %s551_s9 = sshll.u32 %s174_s8, 6 }
  0x32   : > { %s64_s10 = ssub.s32 %s850_s18, %s1176_s6  ;;  %s1008_s13 = scalar_lea.hbm %s1146_s2, %s552_s11 }
  0x33   : > { %p65_p3 = scmp.eq.s32.totalorder %s64_s10, 0  ;;  %s178_s29 = scalar_lea.vmem [#allocation7], %s551_s9 }
  0x34   : > { %s184_s14 = sshll.u32 %s178_s29, 4  ;;  %s1015_s23 = scalar_lea.sflag [#allocation8], %s174_s8  ;;  %s1013_s14 = int_to_ptr.vmem [resolvable:$true] %s184_s14 }
  0x35   : > { %s1011_s21 = scalar_select %p65_p3, %s842_s16, %s67_s7  }
  0x36   : > { %s738_s28 = scalar_lea.hbm %s1008_s13, 1024  ;;  %p1163_p8 = scmp.ne.s32.totalorder %s1162_s5, 0 }
  0x37   : > { %p739_p6 = scmp.ne.s32.totalorder %s1008_s13, %s738_s28  ;;  %s743_s12 = scalar_lea.hbm %s1146_s2, 2048 }
  0x38   : > { %p740_p12 = pneg %p1163_p8  ;;  %p744_p2 = scmp.lt.u32.totalorder %s1008_s13, %s1146_s2 }
  0x39   : > { %p745_p7 = scmp.lt.u32.totalorder %s743_s12, %s738_s28  ;;  %p747_p11 = scmp.lt.u32.totalorder %s738_s28, %s1008_s13 }
  0x3a   : > { %p741_p0 = pnand %p740_p12, %p739_p6 }
  0x3b   : > { %p746_p9 = por %p745_p7, %p744_p2 }
  0x3c   : > { %p742_p5 = pneg %p741_p0 }
  0x3d   : > { %p748_p13 = por %p747_p11, %p746_p9 }
  0x3f   : > { %p749_p4 = pnand %p748_p13, %p742_p5 }
  0x41   : > { %752 = shalt.err (!%p749_p4)
}
  0x42   : > { %s753_s7 = scalar_lea.vmem %s1013_s14, 1024  ;;  %s859_s8 = smov [#allocation7]  }
  0x43   : > { %p754_p1 = scmp.ne.s32.totalorder %s1013_s14, %s753_s7  ;;  %s758_s29 = sshll.u32 %s859_s8, 4  ;;  %s759_s29 = int_to_ptr.vmem [resolvable:$false] %s758_s29 }
  0x44   : > { %s760_s10 = scalar_lea.vmem %s759_s29, 2048  ;;  %p761_p6 = scmp.lt.s32.totalorder %s1013_s14, %s759_s29 }
  0x45   : > { %p756_p10 = pnand %p754_p1, %p740_p12  ;;  %p762_p0 = scmp.lt.s32.totalorder %s760_s10, %s753_s7 }
  0x47   : > { %p757_p3 = pneg %p756_p10  ;;  %p763_p2 = por %p762_p0, %p761_p6 }
  0x49   : > { %p764_p7 = pnand %p763_p2, %p757_p3 }
  0x4b   : > { %767 = shalt.err (!%p764_p7)
}
  0x4c   : > { %s860_s28 = smov 64   ;;  %s861_s11 = smov 4  }
  0x4d   : > { %637 = dma.hbm_to_vmem [thread:$0]  (!%p1163_p8), %s1008_s13, 1024, %s1013_s14, %s1015_s23, %s857_s20, %s860_s28, %s861_s11  }
  0x4e   : > { %p1164_p12 = scmp.ne.s32.totalorder %s1160_s27, 0 }
  0x4f   : > { %p1165_p5 = scmp.ne.s32.totalorder (!%p1164_p12), %s1155_s22, 0 }
  0x50   : > { %202 = sbr.rel (%p1164_p12) target bundleno = 364 (0x16c), region = 32 }
  0x57   : > { %821 = dma.done.wait (%p1165_p5), [#allocation5], 1024  }
  0x58   : > { %823 = vsyncadd (%p1165_p5), [#allocation5], 4294966272  ;;  %s1051_s12 = sand.u32 1, %s838_s0   ;;  %p1166_p8 = scmp.ne.s32.totalorder %s1157_s24, 0 }
  0x59   : > { %s555_s9 = sshll.u32 %s1051_s12, 6  ;;  %s209_s5 = scalar_lea.sflag [#allocation8], %s1051_s12 }
  0x5a   : > { %s1057_s20 = scalar_lea.vmem [#allocation7], %s555_s9 }
  0x5b   : > { %825 = dma.done.wait (%p1166_p8), %s209_s5, 1024  }
  0x5c   : > { %827 = vsyncadd (%p1166_p8), %s209_s5, 4294966272  ;;  %v702_v0 = vld [vmem:[%s1057_s20] sm:$0xff]   ;;  %v703_v1 = vld [vmem:[%s1057_s20 + $0x8] sm:$0xff]   ;;  %p239_p9 = scmp.lt.s32.totalorder %s846_s17, 1  ;;  %s1078_s14 = scalar_lea.vmem [#allocation9], %s555_s9 }
  0x5d   : > { %582 = vmatprep.subr.bf16.mxu0 %v702_v0  ;;  %606 = vmatprep.subr.bf16.mxu1 %v702_v0  ;;  %v704_v2 = vld [vmem:[%s1057_s20 + $0x10] sm:$0xff]   ;;  %v705_v3 = vld [vmem:[%s1057_s20 + $0x18] sm:$0xff]   ;;  %v244_v4 = vld [vmem:[#allocation4] sm:$0xff]  ;;  %s440_s23 = sshll.u32 %s1078_s14, 4  ;;  %s567_s30 = sshll.u32 %s846_s17, 7  ;;  %s1086_s23 = int_to_ptr.vmem [resolvable:$true] %s440_s23 }
  0x5e   : > { %583 = vmatpush3.bf16.msra.mxu0 %v702_v0  ;;  %614 = vmatpush3.bf16.msra.mxu1 %v702_v0  ;;  %v245_v5 = vld [vmem:[#allocation4 + $0x8] sm:$0xff]  ;;  %v248_v6 = vld [vmem:[#allocation4 + $0x20] sm:$0xff]  ;;  %v708_v12 = vld [vmem:[%s1057_s20 + $0x30] sm:$0xff]   ;;  %s240_s22 = scalar_select %p239_p9, %s846_s17, 1 }
  0x5f   : > { %584 = vmatprep.subr.bf16.mxu0 %v703_v1  ;;  %607 = vmatprep.subr.bf16.mxu1 %v703_v1  ;;  %v252_v7 = vpack.c.bf16 %v245_v5, %v244_v4  ;;  %v249_v8 = vld [vmem:[#allocation4 + $0x28] sm:$0xff]  ;;  %v706_v10 = vld [vmem:[%s1057_s20 + $0x20] sm:$0xff]   ;;  %v709_v13 = vld [vmem:[%s1057_s20 + $0x38] sm:$0xff]   ;;  %s1091_s8 = scalar_lea.hbm %s1148_s4, %s567_s30  ;;  %s425_s29 = scalar_lea.sflag [#allocation6], %s1051_s12 }
  0x60   : > { %v254_v9 = vpack.c.bf16 %v249_v8, %v248_v6  ;;  %v707_v11 = vld [vmem:[%s1057_s20 + $0x28] sm:$0xff]   ;;  %v246_v14 = vld [vmem:[#allocation4 + $0x10] sm:$0xff]  ;;  %v247_v15 = vld [vmem:[#allocation4 + $0x18] sm:$0xff]  ;;  %s241_s13 = scalar_lea.vmem %s1147_s3, %s240_s22  ;;  %s768_s10 = scalar_lea.vmem %s1086_s23, 1024 }
  0x61   : > { %598 = vmatprep.mubr.bf16.mxu0 %v252_v7  ;;  %v250_v16 = vld [vmem:[#allocation4 + $0x30] sm:$0xff]  ;;  %v251_v17 = vld [vmem:[#allocation4 + $0x38] sm:$0xff]  ;;  %v253_v18 = vpack.c.bf16 %v247_v15, %v246_v14  ;;  %v557_v20 = vld [vmem:[%s241_s13] ss:$0 sm:$0xff]  ;;  %p769_p11 = scmp.ne.s32.totalorder %s1086_s23, %s768_s10  ;;  %p1167_p13 = scmp.ne.s32.totalorder %s1158_s25, 0 }
  0x62   : > { %585 = vmatpush3.bf16.msra.mxu0 %v703_v1  ;;  %615 = vmatpush3.bf16.msra.mxu1 %v703_v1  ;;  %v255_v19 = vpack.c.bf16 %v251_v17, %v250_v16  ;;  %s862_s28 = smov [#allocation9]  }
  0x63   : > { %586 = vmatprep.subr.bf16.mxu0 %v704_v2  ;;  %608 = vmatprep.subr.bf16.mxu1 %v704_v2  ;;  %p770_p4 = pnand %p769_p11, %p1167_p13  ;;  %s772_s11 = sshll.u32 %s862_s28, 4  ;;  %s773_s11 = int_to_ptr.vmem [resolvable:$false] %s772_s11 }
  0x64   : > { %602 = vmatprep.mubr.bf16.mxu1 %v254_v9  ;;  %s774_s9 = scalar_lea.vmem %s773_s11, 2048  ;;  %p775_p10 = scmp.lt.s32.totalorder %s1086_s23, %s773_s11 }
  0x65   : > { %p771_p1 = pneg %p770_p4  ;;  %p776_p3 = scmp.lt.s32.totalorder %s774_s9, %s768_s10 }
  0x66   : > { %587 = vmatpush3.bf16.msra.mxu0 %v704_v2  ;;  %616 = vmatpush3.bf16.msra.mxu1 %v704_v2 }
  0x67   : > { %588 = vmatprep.subr.bf16.mxu0 %v705_v3  ;;  %609 = vmatprep.subr.bf16.mxu1 %v705_v3  ;;  %p777_p6 = por %p776_p3, %p775_p10 }
  0x69   : > { %p778_p0 = pnand %p777_p6, %p771_p1 }
  0x6a   : > { %589 = vmatpush3.bf16.msra.mxu0 %v705_v3  ;;  %617 = vmatpush3.bf16.msra.mxu1 %v705_v3 }
  0x6b   : > { %590 = vmatprep.subr.bf16.mxu0 %v706_v10  ;;  %610 = vmatprep.subr.bf16.mxu1 %v706_v10 }
  0x6e   : > { %591 = vmatpush3.bf16.msra.mxu0 %v706_v10  ;;  %618 = vmatpush3.bf16.msra.mxu1 %v706_v10 }
  0x6f   : > { %592 = vmatprep.subr.bf16.mxu0 %v707_v11  ;;  %611 = vmatprep.subr.bf16.mxu1 %v707_v11 }
  0x72   : > { %593 = vmatpush3.bf16.msra.mxu0 %v707_v11  ;;  %619 = vmatpush3.bf16.msra.mxu1 %v707_v11 }
  0x73   : > { %594 = vmatprep.subr.bf16.mxu0 %v708_v12  ;;  %612 = vmatprep.subr.bf16.mxu1 %v708_v12 }
  0x76   : > { %595 = vmatpush3.bf16.msra.mxu0 %v708_v12  ;;  %620 = vmatpush3.bf16.msra.mxu1 %v708_v12 }
  0x77   : > { %596 = vmatprep.subr.bf16.mxu0 %v709_v13  ;;  %613 = vmatprep.subr.bf16.mxu1 %v709_v13 }
  0x7a   : > { %597 = vmatpush3.bf16.msra.mxu0 %v709_v13  ;;  %621 = vmatpush3.bf16.msra.mxu1 %v709_v13 }
  0x7d   : > { %599 = vmatmul.mubr.bf16.vlgmr.msra.gmra.mrb[0].mxu0 %v253_v18  ;;  %603 = vmatmul.mubr.bf16.vlgmr.msra.gmra.mrb[0].mxu1 %v255_v19 }
 0x150   : > { %v600_v21 = vpop.f32.mrb[0].mxu0  ;;  %v604_v22 = vpop.f32.mrb[0].mxu1 }
 0x151   : > { %v370_v23 = vadd.f32 %v600_v21, %v557_v20  ;;  %v386_v24 = vadd.f32 %v604_v22, %v557_v20  ;;  %v361_v25 = vpop.f32.mrb[1].mxu0  ;;  %v377_v26 = vpop.f32.mrb[1].mxu1 }
 0x152   : > { %v362_v27 = vadd.f32 %v557_v20, %v361_v25  ;;  %v378_v28 = vadd.f32 %v557_v20, %v377_v26  ;;  %v601_v29 = vpop.f32.mrb[2].mxu0  ;;  %v605_v30 = vpop.f32.mrb[2].mxu1 }
 0x153   : > { %vm394_vm0 = vcmp.ge.f32.partialorder %v370_v23, 0.0  ;;  %v402_v31 = vmul.f32 0.2, %v370_v23  ;;  %vm398_vm1 = vcmp.ge.f32.partialorder %v386_v24, 0.0  ;;  %v406_v32 = vmul.f32 0.2, %v386_v24 }
 0x154   : > { %vm392_vm2 = vcmp.ge.f32.partialorder %v362_v27, 0.0  ;;  %v400_v33 = vmul.f32 0.2, %v362_v27  ;;  %vm396_vm3 = vcmp.ge.f32.partialorder %v378_v28, 0.0  ;;  %v404_v34 = vmul.f32 0.2, %v378_v28 }
 0x155   : > { %v410_v35 = vsel %vm394_vm0, %v370_v23, %v402_v31  ;;  %v414_v36 = vsel %vm398_vm1, %v386_v24, %v406_v32  ;;  %v373_v37 = vadd.f32 %v601_v29, %v557_v20  ;;  %v389_v38 = vadd.f32 %v605_v30, %v557_v20  ;;  %v364_v39 = vpop.f32.mrb[3].mxu0  ;;  %v380_v40 = vpop.f32.mrb[3].mxu1 }
 0x156   : > { %418 = vst [vmem:[%s1078_s14 + $0x10] sm:$0xff] %v410_v35  ;;  %422 = vst [vmem:[%s1078_s14 + $0x30] sm:$0xff] %v414_v36  ;;  %v408_v41 = vsel %vm392_vm2, %v362_v27, %v400_v33  ;;  %v412_v42 = vsel %vm396_vm3, %v378_v28, %v404_v34  ;;  %v365_v43 = vadd.f32 %v557_v20, %v364_v39 }
 0x157   : > { %v381_v44 = vadd.f32 %v557_v20, %v380_v40  ;;  %416 = vst [vmem:[%s1078_s14] sm:$0xff] %v408_v41  ;;  %420 = vst [vmem:[%s1078_s14 + $0x20] sm:$0xff] %v412_v42  ;;  %vm395_vm4 = vcmp.ge.f32.partialorder %v373_v37, 0.0  ;;  %v403_v45 = vmul.f32 0.2, %v373_v37  ;;  %vm399_vm5 = vcmp.ge.f32.partialorder %v389_v38, 0.0 }
 0x158   : > { %v407_v46 = vmul.f32 0.2, %v389_v38  ;;  %vm393_vm6 = vcmp.ge.f32.partialorder %v365_v43, 0.0  ;;  %v401_v47 = vmul.f32 0.2, %v365_v43 }
 0x159   : > { %vm397_vm7 = vcmp.ge.f32.partialorder %v381_v44, 0.0  ;;  %v405_v48 = vmul.f32 0.2, %v381_v44  ;;  %v411_v49 = vsel %vm395_vm4, %v373_v37, %v403_v45 }
 0x15a   : > { %v415_v50 = vsel %vm399_vm5, %v389_v38, %v407_v46  ;;  %419 = vst [vmem:[%s1078_s14 + $0x18] sm:$0xff] %v411_v49  ;;  %v409_v51 = vsel %vm393_vm6, %v365_v43, %v401_v47 }
 0x15b   : > { %423 = vst [vmem:[%s1078_s14 + $0x38] sm:$0xff] %v415_v50  ;;  %v413_v52 = vsel %vm397_vm7, %v381_v44, %v405_v48  ;;  %417 = vst [vmem:[%s1078_s14 + $0x8] sm:$0xff] %v409_v51 }
 0x15c   : > { %421 = vst [vmem:[%s1078_s14 + $0x28] sm:$0xff] %v413_v52 }
 0x15d   : > { %781 = shalt.err (!%p778_p0)
}
 0x15e   : > { %s782_s5 = scalar_lea.hbm %s1091_s8, 1024  ;;  %s786_s24 = scalar_lea.hbm %s1148_s4, 2048 }
 0x15f   : > { %p783_p2 = scmp.ne.s32.totalorder %s1091_s8, %s782_s5  ;;  %p787_p5 = scmp.lt.u32.totalorder %s1091_s8, %s1148_s4 }
 0x160   : > { %p788_p8 = scmp.lt.u32.totalorder %s786_s24, %s782_s5  ;;  %p790_p11 = scmp.lt.u32.totalorder %s782_s5, %s1091_s8 }
 0x161   : > { %p784_p7 = pnand %p783_p2, %p1167_p13 }
 0x162   : > { %p789_p9 = por %p788_p8, %p787_p5 }
 0x163   : > { %p785_p12 = pneg %p784_p7 }
 0x164   : > { %p791_p4 = por %p790_p11, %p789_p9 }
 0x166   : > { %p792_p1 = pnand %p791_p4, %p785_p12 }
 0x168   : > { %795 = shalt.err (!%p792_p1)
}
 0x169   : > { %s863_s14 = smov 128   ;;  %s864_s30 = smov 256  }
 0x16a   : > { %s865_s17 = smov 8  }
 0x16b   : > { %628 = dma.vmem_to_hbm [thread:$0]  (%p1167_p13), %s1086_s23, 1024, %s1091_s8, %s425_s29, %s863_s14, %s864_s30, %s865_s17  }
 0x16c PF: > { %s455_s7 = sand.u32 1, %s834_s15   ;;  %p1168_p10 = scmp.ne.s32.totalorder %s1159_s26, 0 }
 0x16d   : > { %p1169_p3 = scmp.ge.s32.totalorder %s854_s19, 2  ;;  %s456_s10 = scalar_lea.sflag [#allocation6], %s455_s7 }
 0x16f   : > { %p639_p6 = pnand %p1169_p3, %p1168_p10 }
 0x171   : > { %829 = dma.done.wait (!%p639_p6), %s456_s10, 1024  }
 0x172   : > { %831 = vsyncadd (!%p639_p6), %s456_s10, 4294966272  ;;  %s22_s19 = sadd.s32 1, %s854_s19   ;;  %s1170_s15 = smov %s838_s0 }
 0x173   : > { %p19_p0 = scmp.ge.s32.totalorder %s22_s19, 4   ;;  %s1171_s0 = smov %s842_s16 }
 0x174   : > { %s1172_s16 = smov %s1011_s21  ;;  %s1173_s17 = smov %s850_s18 }
 0x175   : > { %s1174_s18 = smov %s1176_s6  ;;  %21 = sbr.rel (!%p19_p0) target bundleno = 7 (0x7), region = 86 }
 0x17c   :  { %461 = vsyncpa [#allocation5], 1 }
 0x17d   :  { %463 = vsyncpa [#allocation5 + $0x1], 1 }
 0x17e   :  { %464 = vsyncpa [#allocation8], 1 }
 0x17f   :  { %466 = vsyncpa [#allocation8 + $0x1], 1 }
 0x180   :  { %467 = vsyncpa [#allocation6], 1 }
 0x181   :  { %469 = vsyncpa [#allocation6 + $0x1], 1 }

</bundles_post_ra>
